<compile_context>
chip_gen: v7x
topology: tpu7x:2x2x1
jax: 0.10.0
libtpu: 0.0.40
codegen_flags: <defaults>
</compile_context>

<pallas_src>
import jax
import jax.numpy as jnp
from jax import lax
from jax.experimental import pallas as pl
from jax.experimental.pallas import tpu as pltpu

LN_EPS = 1e-5  # nn.LayerNorm default

_VMEM_LIMIT_BYTES = 48 * 1024 * 1024   # explicit scoped-VMEM budget (safe v5e/v6e/v7x)
_TILE_DATA_BUDGET = 24 * 1024 * 1024   # in+out, double-buffered tile data budget
_MAX_TILE_ROWS = 1024                  # diminishing returns past ~512-1024 rows
_MIN_LANE_D = 128                      # below this, fall back to plain XLA LayerNorm


def _layernorm_kernel(x_ref, w_ref, b_ref, o_ref):
    # x_ref: (tile_rows, D) tile of tokens; w_ref/b_ref: (1, D) affine params.
    x = x_ref[...].astype(jnp.float32)
    d = x.shape[-1]
    inv_d = jnp.float32(1.0 / d)
    # Fused single pass over the tile: sum(x) and sum(x*x) together.
    s1 = jnp.sum(x, axis=-1, keepdims=True)
    s2 = jnp.sum(x * x, axis=-1, keepdims=True)
    mean = s1 * inv_d
    var = jnp.maximum(s2 * inv_d - mean * mean, 0.0)  # biased var (PyTorch LN)
    inv = lax.rsqrt(var + LN_EPS)                     # EUP slot, effectively free
    w = w_ref[...].astype(jnp.float32)
    b = b_ref[...].astype(jnp.float32)
    y = (x - mean) * inv * w + b
    o_ref[...] = y.astype(o_ref.dtype)


def _sublane(dtype):
    # Minimum sublane multiple for the second-to-last block dim.
    return 16 if jnp.dtype(dtype).itemsize == 2 else 8


def _round_up(x, m):
    return ((x + m - 1) // m) * m


def _select_tile_rows(R, D, dtype):
    """Pick the largest row tile that fits the VMEM budget (double-buffered in+out)."""
    sub = _sublane(dtype)
    itemsize = jnp.dtype(dtype).itemsize
    per_row_bytes = 2 * 2 * D * itemsize          # (in + out) x double-buffer
    fit_rows = max(sub, (_TILE_DATA_BUDGET // per_row_bytes))
    tile = min(_MAX_TILE_ROWS, fit_rows, _round_up(R, sub))
    tile = max(sub, (tile // sub) * sub)
    return tile


def layernorm_pallas(x2d, weight, bias):
    """LayerNorm over last dim of a (R, D) array via pallas_call."""
    R, D = x2d.shape
    tile_rows = _select_tile_rows(R, D, x2d.dtype)
    R_pad = _round_up(R, tile_rows)
    if R_pad != R:
        # Wrapper-side padding; padded zero rows normalize to zeros (no NaN) and
        # are sliced off below.
        x2d = jnp.pad(x2d, ((0, R_pad - R), (0, 0)))

    w2d = weight.reshape(1, D)
    b2d = bias.reshape(1, D)

    out = pl.pallas_call(
        _layernorm_kernel,
        out_shape=jax.ShapeDtypeStruct((R_pad, D), x2d.dtype),
        grid_spec=pltpu.PrefetchScalarGridSpec(
            num_scalar_prefetch=0,
            grid=(R_pad // tile_rows,),
            in_specs=[
                pl.BlockSpec((tile_rows, D), lambda i: (i, 0)),
                pl.BlockSpec((1, D), lambda i: (0, 0)),   # resident across grid
                pl.BlockSpec((1, D), lambda i: (0, 0)),   # resident across grid
            ],
            out_specs=pl.BlockSpec((tile_rows, D), lambda i: (i, 0)),
        ),
        compiler_params=pltpu.CompilerParams(
            dimension_semantics=("parallel",),           # sharded across TCs on v7x
            vmem_limit_bytes=_VMEM_LIMIT_BYTES,
        ),
    )(x2d, w2d, b2d)

    if R_pad != R:
        out = out[:R]
    return out


def _layernorm_ref(x, weight, bias):
    mean = jnp.mean(x.astype(jnp.float32), axis=-1, keepdims=True)
    xc = x.astype(jnp.float32) - mean
    var = jnp.mean(xc * xc, axis=-1, keepdims=True)
    y = xc * lax.rsqrt(var + LN_EPS) * weight.astype(jnp.float32) + bias.astype(jnp.float32)
    return y.astype(x.dtype)


def vit_head_encoder_forward(x, ln_weight, ln_bias):
    """Forward of ViTHeadEncoder: LayerNorm x_inp, pass through the rest."""
    x_inp, mask, ids_restore, imgs = x
    B, N, D = x_inp.shape
    if D < _MIN_LANE_D:
        # Lane-sparse (D < 128): the Pallas kernel cannot beat fused XLA here.
        y = _layernorm_ref(x_inp, ln_weight, ln_bias)
    else:
        x2d = x_inp.reshape(B * N, D)
        y = layernorm_pallas(x2d, ln_weight, ln_bias).reshape(B, N, D)
    return (y, mask, ids_restore, imgs)


if __name__ == "__main__":
    key = jax.random.PRNGKey(0)
    k1, k2 = jax.random.split(key)

    # Small shapes consistent with the module's forward signature.
    # D >= 128 (lane-dense) and B*N = 100 (non-divisible by the row tile) so the
    # Pallas path + padding logic are both exercised.
    B, N, D = 2, 50, 256        # batch, tokens, embed_dim
    C, H, W = 3, 16, 16         # imgs pass-through

    x_inp = jax.random.normal(k1, (B, N, D), dtype=jnp.float32)
    mask = (jax.random.uniform(k2, (B, N)) > 0.5).astype(jnp.float32)
    ids_restore = jnp.tile(jnp.arange(N, dtype=jnp.int32)[None, :], (B, 1))
    imgs = jax.random.normal(jax.random.PRNGKey(1), (B, C, H, W), dtype=jnp.float32)

    # Deterministic LayerNorm params per _init_weights: weight=1.0, bias=0.0.
    ln_weight = jnp.ones((D,), dtype=jnp.float32)
    ln_bias = jnp.zeros((D,), dtype=jnp.float32)

    out = vit_head_encoder_forward((x_inp, mask, ids_restore, imgs), ln_weight, ln_bias)
    out = jax.block_until_ready(out)

    # Sanity check against a plain-JAX LayerNorm reference.
    ref = _layernorm_ref(x_inp, ln_weight, ln_bias)
    assert jnp.allclose(out[0], ref, atol=1e-4, rtol=1e-4)
    assert jnp.array_equal(out[1], mask)
    assert jnp.array_equal(out[2], ids_restore)
    assert jnp.array_equal(out[3], imgs)

    # Also exercise the small-D dispatch path (handled by XLA, not Pallas).
    Ds = 32
    xs = jax.random.normal(jax.random.PRNGKey(2), (B, 8, Ds), dtype=jnp.float32)
    outs = vit_head_encoder_forward(
        (xs, mask[:, :8], ids_restore[:, :8], imgs),
        jnp.ones((Ds,), jnp.float32), jnp.zeros((Ds,), jnp.float32))
    outs = jax.block_until_ready(outs)
    assert jnp.allclose(outs[0], _layernorm_ref(xs, jnp.ones((Ds,)), jnp.zeros((Ds,))),
                        atol=1e-5, rtol=1e-5)

    print("KERNEL_OK")
</pallas_src>

<mosaic_0001>
module attributes {stable_mosaic.version = 11 : i64} {
  func.func @_layernorm_kernel(%arg0: i32, %arg1: memref<104x256xf32, #tpu.memory_space<vmem>>, %arg2: memref<1x256xf32, #tpu.memory_space<vmem>>, %arg3: memref<1x256xf32, #tpu.memory_space<vmem>>, %arg4: memref<104x256xf32, #tpu.memory_space<vmem>>) attributes {dimension_semantics = [#tpu.dimension_semantics<parallel>], iteration_bounds = array<i64: 1>, scalar_prefetch = 0 : i64, scratch_operands = 0 : i64, tpu.core_type = #tpu.core_type<tc>, window_params = [{transform_indices = @transform_0, window_bounds = array<i64: 104, 256>}, {pipeline_mode = #tpu.pipeline_mode<synchronous>, transform_indices = @transform_1, window_bounds = array<i64: 1, 256>}, {pipeline_mode = #tpu.pipeline_mode<synchronous>, transform_indices = @transform_2, window_bounds = array<i64: 1, 256>}, {transform_indices = @transform_3, window_bounds = array<i64: 104, 256>}]} {
    %c0 = arith.constant 0 : index
    %c0_0 = arith.constant 0 : index
    %0 = vector.load %arg1[%c0, %c0_0] : memref<104x256xf32, #tpu.memory_space<vmem>>, vector<104x256xf32>
    %cst = arith.constant dense<0.000000e+00> : vector<104xf32>
    %1 = vector.multi_reduction <add>, %0, %cst [1] : vector<104x256xf32> to vector<104xf32>
    %2 = vector.shape_cast %1 : vector<104xf32> to vector<104x1xf32>
    %3 = arith.mulf %0, %0 : vector<104x256xf32>
    %cst_1 = arith.constant dense<0.000000e+00> : vector<104xf32>
    %4 = vector.multi_reduction <add>, %3, %cst_1 [1] : vector<104x256xf32> to vector<104xf32>
    %5 = vector.shape_cast %4 : vector<104xf32> to vector<104x1xf32>
    %cst_2 = arith.constant 3.906250e-03 : f32
    %6 = vector.broadcast %cst_2 : f32 to vector<104x1xf32>
    %7 = arith.mulf %2, %6 : vector<104x1xf32>
    %cst_3 = arith.constant 3.906250e-03 : f32
    %8 = vector.broadcast %cst_3 : f32 to vector<104x1xf32>
    %9 = arith.mulf %5, %8 : vector<104x1xf32>
    %10 = arith.mulf %7, %7 : vector<104x1xf32>
    %11 = arith.subf %9, %10 : vector<104x1xf32>
    %cst_4 = arith.constant 0.000000e+00 : f32
    %12 = vector.broadcast %cst_4 : f32 to vector<104x1xf32>
    %13 = arith.maximumf %11, %12 : vector<104x1xf32>
    %cst_5 = arith.constant 9.99999974E-6 : f32
    %14 = vector.broadcast %cst_5 : f32 to vector<104x1xf32>
    %15 = arith.addf %13, %14 : vector<104x1xf32>
    %16 = math.rsqrt %15 : vector<104x1xf32>
    %c0_6 = arith.constant 0 : index
    %c0_7 = arith.constant 0 : index
    %17 = vector.load %arg2[%c0_6, %c0_7] : memref<1x256xf32, #tpu.memory_space<vmem>>, vector<1x256xf32>
    %c0_8 = arith.constant 0 : index
    %c0_9 = arith.constant 0 : index
    %18 = vector.load %arg3[%c0_8, %c0_9] : memref<1x256xf32, #tpu.memory_space<vmem>>, vector<1x256xf32>
    %19 = vector.broadcast %7 : vector<104x1xf32> to vector<104x256xf32>
    %20 = arith.subf %0, %19 : vector<104x256xf32>
    %21 = vector.broadcast %16 : vector<104x1xf32> to vector<104x256xf32>
    %22 = arith.mulf %20, %21 : vector<104x256xf32>
    %23 = vector.broadcast %17 : vector<1x256xf32> to vector<104x256xf32>
    %24 = arith.mulf %22, %23 : vector<104x256xf32>
    %25 = vector.broadcast %18 : vector<1x256xf32> to vector<104x256xf32>
    %26 = arith.addf %24, %25 : vector<104x256xf32>
    %c0_10 = arith.constant 0 : index
    %c0_11 = arith.constant 0 : index
    %27 = vector.load %arg4[%c0_10, %c0_11] : memref<104x256xf32, #tpu.memory_space<vmem>>, vector<104x256xf32>
    tpu.vector_store %arg4[%c0_10, %c0_11], %26 {strides = array<i32>} : memref<104x256xf32, #tpu.memory_space<vmem>>, vector<104x256xf32>,
    return
  }
  func.func @transform_0(%arg0: i32) -> (i32, i32) {
    %c0_i32 = arith.constant 0 : i32
    %c0_i32_0 = arith.constant 0 : i32
    return %arg0, %c0_i32 : i32, i32
  }
  func.func @transform_1(%arg0: i32) -> (i32, i32) {
    %c0_i32 = arith.constant 0 : i32
    %c0_i32_0 = arith.constant 0 : i32
    %c0_i32_1 = arith.constant 0 : i32
    return %c0_i32, %c0_i32_0 : i32, i32
  }
  func.func @transform_2(%arg0: i32) -> (i32, i32) {
    %c0_i32 = arith.constant 0 : i32
    %c0_i32_0 = arith.constant 0 : i32
    %c0_i32_1 = arith.constant 0 : i32
    return %c0_i32, %c0_i32_0 : i32, i32
  }
  func.func @transform_3(%arg0: i32) -> (i32, i32) {
    %c0_i32 = arith.constant 0 : i32
    %c0_i32_0 = arith.constant 0 : i32
    return %arg0, %c0_i32 : i32, i32
  }
}

</mosaic_0001>

<bundles_post_ra>
// kernel: tpu_custom_call.1
= control target key start
LH: loop header
LB: loop body
LE: loop exit
PB: predicated region body
PF: predicated region fallthrough
CT: control target
= control target key end

     0   :  { %8 = vsyncpa [#allocation3], 0  ;;  %s928_s0 = inlined_call_operand.hbm [shape: f32[104,256], index: 0, kind: input, shape index: {}]   ;;  %s929_s1 = inlined_call_operand.vmem [shape: f32[1,256], index: 1, kind: input, shape index: {}]   ;;  %s930_s2 = inlined_call_operand.vmem [shape: f32[1,256], index: 2, kind: input, shape index: {}]   ;;  %s931_s3 = inlined_call_operand.hbm [shape: f32[104,256], index: 3, kind: output, shape index: {}]  }
   0x1   :  { %9 = vsyncpa [#allocation4], 0  ;;  %s499_s12 = smov [#allocation2]   ;;  %s451_s16 = scalar_lea.hbm %s928_s0, 3328 }
   0x2   :  { %s15_s13 = sshll.u32 %s499_s12, 4  ;;  %p452_p0 = scmp.ne.s32.totalorder %s928_s0, %s451_s16  ;;  %s16_s13 = int_to_ptr.vmem [resolvable:$true] %s15_s13 }
   0x3   :  { %p455_p1 = scmp.lt.u32.totalorder %s451_s16, %s928_s0 }
   0x5   :  { %p457_p2 = pnand %p455_p1, %p452_p0 }
   0x7   :  { %460 = shalt.err (!%p457_p2)
}
   0x8   :  { %s461_s21 = scalar_lea.vmem %s16_s13, 3328  ;;  %p466_p4 = scmp.lt.s32.totalorder %s16_s13, %s16_s13 }
   0x9   :  { %p462_p3 = scmp.ne.s32.totalorder %s16_s13, %s461_s21  ;;  %p467_p5 = scmp.lt.s32.totalorder %s461_s21, %s461_s21 }
   0xb   :  { %p468_p6 = por %p467_p5, %p466_p4 }
   0xd   :  { %p469_p7 = pnand %p468_p6, %p462_p3 }
   0xf   :  { %472 = shalt.err (!%p469_p7)
}
  0x10   :  { %s500_s22 = smov 256   ;;  %s501_s23 = smov 16  }
  0x11   :  { %21 = dma.hbm_to_vmem [thread:$0]  %s928_s0, 3328, %s16_s13, [#allocation3], %s500_s22, %s500_s22, %s501_s23  }
  0x12   :  { %495 = dma.done.wait [#allocation3], 3328  }
  0x13   :  { %496 = vsyncadd [#allocation3], 4294963968  ;;  %v538_v0 = vld [vmem:[#allocation2 + $0x20] sm:$0xff]  ;;  %v540_v1 = vld [vmem:[#allocation2 + $0x28] sm:$0xff] }
  0x14   :  { %v542_v2 = vld [vmem:[#allocation2] sm:$0xff]  ;;  %v61_v3 = vadd.f32 %v540_v1, %v538_v0  ;;  %v546_v4 = vld [vmem:[#allocation2 + $0x8] sm:$0xff]  ;;  %v548_v5 = vld [vmem:[#allocation2 + $0x30] sm:$0xff]  ;;  %v98_v41 = vmul.f32 %v538_v0, %v538_v0  ;;  %v99_v42 = vmul.f32 %v540_v1, %v540_v1 }
  0x15   :  { %v550_v6 = vld [vmem:[#allocation2 + $0x38] sm:$0xff]  ;;  %v55_v7 = vadd.f32 %v546_v4, %v542_v2  ;;  %v554_v8 = vld [vmem:[#allocation2 + $0x10] sm:$0xff]  ;;  %v566_v14 = vld [vmem:[#allocation2 + $0x40] sm:$0xff]  ;;  %v94_v35 = vmul.f32 %v542_v2, %v542_v2  ;;  %v95_v36 = vmul.f32 %v546_v4, %v546_v4  ;;  %v100_v50 = vmul.f32 %v548_v5, %v548_v5 }
  0x16   :  { %v556_v9 = vld [vmem:[#allocation2 + $0x18] sm:$0xff]  ;;  %62 = vadd.xlane.f32.xlu1 %v61_v3  ;;  %v64_v10 = vadd.f32 %v550_v6, %v548_v5  ;;  %v562_v12 = vld [vmem:[#allocation2 + $0x50] sm:$0xff]  ;;  %v568_v15 = vld [vmem:[#allocation2 + $0x48] sm:$0xff]  ;;  %v96_v44 = vmul.f32 %v554_v8, %v554_v8  ;;  %v126_v46 = vadd.f32 %v99_v42, %v98_v41  ;;  %v102_v47 = vmul.f32 %v566_v14, %v566_v14 }
  0x17   :  { %56 = vadd.xlane.f32.xlu0 %v55_v7  ;;  %v58_v11 = vadd.f32 %v556_v9, %v554_v8  ;;  %v564_v13 = vld [vmem:[#allocation2 + $0x58] sm:$0xff]  ;;  %v67_v17 = vadd.f32 %v568_v15, %v566_v14  ;;  %v574_v18 = vld [vmem:[#allocation2 + $0x70] sm:$0xff]  ;;  %v578_v20 = vld [vmem:[#allocation2 + $0x60] sm:$0xff]  ;;  %v120_v40 = vadd.f32 %v95_v36, %v94_v35  ;;  %v97_v45 = vmul.f32 %v556_v9, %v556_v9 }
  0x18   :  { %v70_v16 = vadd.f32 %v564_v13, %v562_v12  ;;  %v576_v19 = vld [vmem:[#allocation2 + $0x78] sm:$0xff]  ;;  %v580_v21 = vld [vmem:[#allocation2 + $0x68] sm:$0xff]  ;;  %v586_v24 = vld [vmem:[#allocation2 + $0x90] sm:$0xff]  ;;  %v103_v48 = vmul.f32 %v568_v15, %v568_v15  ;;  %v101_v51 = vmul.f32 %v550_v6, %v550_v6  ;;  %v106_v53 = vmul.f32 %v578_v20, %v578_v20 }
  0x19   :  { %v76_v22 = vadd.f32 %v576_v19, %v574_v18  ;;  %v73_v23 = vadd.f32 %v580_v21, %v578_v20  ;;  %v588_v25 = vld [vmem:[#allocation2 + $0x98] sm:$0xff]  ;;  %v590_v26 = vld [vmem:[#allocation2 + $0x80] sm:$0xff]  ;;  %v592_v27 = vld [vmem:[#allocation2 + $0x88] sm:$0xff]  ;;  %v123_v49 = vadd.f32 %v97_v45, %v96_v44  ;;  %v107_v54 = vmul.f32 %v580_v21, %v580_v21 }
  0x1a   :  { %65 = vadd.xlane.f32.xlu1 %v64_v10  ;;  %v82_v28 = vadd.f32 %v588_v25, %v586_v24  ;;  %v79_v29 = vadd.f32 %v592_v27, %v590_v26  ;;  %v598_v30 = vld [vmem:[#allocation2 + $0xb0] sm:$0xff]  ;;  %v600_v31 = vld [vmem:[#allocation2 + $0xb8] sm:$0xff]  ;;  %v602_v32 = vld [vmem:[#allocation2 + $0xa0] sm:$0xff]  ;;  %v132_v52 = vadd.f32 %v103_v48, %v102_v47  ;;  %v129_v55 = vadd.f32 %v101_v51, %v100_v50 }
  0x1b   :  { %59 = vadd.xlane.f32.xlu0 %v58_v11  ;;  %933 = vst [vmem:[#allocation8_spill] sm:$0xff] %v600_v31  ;;  %v604_v33 = vld [vmem:[#allocation2 + $0xa8] sm:$0xff]  ;;  %v88_v34 = vadd.f32 %v600_v31, %v598_v30  ;;  %v614_v38 = vld [vmem:[#allocation2 + $0xc0] sm:$0xff]  ;;  %v104_v56 = vmul.f32 %v562_v12, %v562_v12  ;;  %v105_v57 = vmul.f32 %v564_v13, %v564_v13  ;;  %v305_v47 = vlaneseq }
  0x1c   :  { %v85_v37 = vadd.f32 %v604_v33, %v602_v32  ;;  %v616_v39 = vld [vmem:[#allocation2 + $0xc8] sm:$0xff]  ;;  %v138_v58 = vadd.f32 %v107_v54, %v106_v53  ;;  %v110_v59 = vmul.f32 %v590_v26, %v590_v26  ;;  %v111_v60 = vmul.f32 %v592_v27, %v592_v27 }
  0x1d   :  { %v91_v43 = vadd.f32 %v616_v39, %v614_v38  ;;  %v135_v61 = vadd.f32 %v105_v57, %v104_v56  ;;  %v108_v62 = vmul.f32 %v574_v18, %v574_v18  ;;  %v109_v63 = vmul.f32 %v576_v19, %v576_v19  ;;  %v250_v57 = vld [vmem:[%s929_s1] sm:$0x3]  ;;  %s502_s1 = smov [#allocation5]  }
  0x1e   :  { %71 = vadd.xlane.f32.xlu1 %v70_v16  ;;  %v144_v3 = vadd.f32 %v111_v60, %v110_v59  ;;  %v114_v7 = vmul.f32 %v602_v32, %v602_v32  ;;  %v115_v10 = vmul.f32 %v604_v33, %v604_v33  ;;  %v112_v16 = vmul.f32 %v586_v24, %v586_v24  ;;  %v251_v59 = vld [vmem:[%s930_s2] sm:$0x3]  ;;  %s409_s2 = sshll.u32 %s502_s1, 4  ;;  %s410_s2 = int_to_ptr.vmem [resolvable:$true] %s409_s2 }
  0x1f   :  { %68 = vadd.xlane.f32.xlu0 %v67_v17  ;;  %v141_v11 = vadd.f32 %v109_v63, %v108_v62  ;;  %v113_v17 = vmul.f32 %v588_v25, %v588_v25  ;;  %v117_v35 = vmul.f32 %v600_v31, %v600_v31  ;;  %v306_v50 = vshrl.u32 %v305_v47, 7  ;;  %s473_s29 = scalar_lea.vmem %s410_s2, 3328  ;;  %p478_p9 = scmp.lt.s32.totalorder %s410_s2, %s410_s2 }
  0x20   :  { %p474_p8 = scmp.ne.s32.totalorder %s410_s2, %s473_s29  ;;  %p479_p10 = scmp.lt.s32.totalorder %s473_s29, %s473_s29 }
  0x21   :  { %v307_v53 = vsub.s32 0, %v306_v50  ;;  %v311_v54 = vsub.s32 1, %v306_v50 }
  0x22   :  { %77 = vadd.xlane.f32.xlu1 %v76_v22  ;;  %v150_v22 = vadd.f32 %v115_v10, %v114_v7  ;;  %p480_p11 = por %p479_p10, %p478_p9 }
  0x23   :  { %74 = vadd.xlane.f32.xlu0 %v73_v23  ;;  %v118_v23 = vmul.f32 %v614_v38, %v614_v38  ;;  %v688_v62 = vrot.slane %v250_v57, %v311_v54  ;;  %v692_v7 = vrot.slane %v251_v59, %v307_v53 }
  0x24   :  { %p481_p12 = pnand %p480_p11, %p474_p8 }
  0x26   :  { %83 = vadd.xlane.f32.xlu1 %v82_v28  ;;  %v119_v28 = vmul.f32 %v616_v39, %v616_v39 }
  0x27   :  { %80 = vadd.xlane.f32.xlu0 %v79_v29  ;;  %v147_v29 = vadd.f32 %v113_v17, %v112_v16 }
  0x28   :  { %v156_v36 = vadd.f32 %v119_v28, %v118_v23  ;;  %v704_v28 = vrot.slane %v251_v59, %v311_v54 }
  0x2a   :  { %89 = vadd.xlane.f32.xlu1 %v88_v34  ;;  %v116_v34 = vmul.f32 %v598_v30, %v598_v30 }
  0x2b   :  { %86 = vadd.xlane.f32.xlu0 %v85_v37 }
  0x2c   :  { %v153_v37 = vadd.f32 %v117_v35, %v116_v34 }
  0x2e   :  { %121 = vadd.xlane.f32.xlu1 %v120_v40 }
  0x2f   :  { %92 = vadd.xlane.f32.xlu0 %v91_v43 }
  0x32   :  { %127 = vadd.xlane.f32.xlu1 %v126_v46 }
  0x33   :  { %124 = vadd.xlane.f32.xlu0 %v123_v49 }
  0x36   :  { %133 = vadd.xlane.f32.xlu1 %v132_v52 }
  0x37   :  { %130 = vadd.xlane.f32.xlu0 %v129_v55 }
  0x3a   :  { %139 = vadd.xlane.f32.xlu1 %v138_v58 }
  0x3b   :  { %136 = vadd.xlane.f32.xlu0 %v135_v61  ;;  %v686_v61 = vrot.slane %v250_v57, %v307_v53 }
  0x3e   :  { %145 = vadd.xlane.f32.xlu1 %v144_v3 }
  0x3f   :  { %142 = vadd.xlane.f32.xlu0 %v141_v11 }
  0x42   :  { %151 = vadd.xlane.f32.xlu1 %v150_v22 }
  0x43   :  { %148 = vadd.xlane.f32.xlu0 %v147_v29 }
  0x46   :  { %157 = vadd.xlane.f32.xlu1 %v156_v36 }
  0x47   :  { %154 = vadd.xlane.f32.xlu0 %v153_v37 }
  0xa3   :  { %v63_v40 = vpop.xlane.xlu1 %62 }
  0xa4   :  { %v57_v41 = vpop.xlane.xlu0 %56  ;;  %v679_v58 = vmul.f32 0.00390625, %v63_v40 }
  0xa5   :  { %v672_v55 = vmul.f32 0.00390625, %v57_v41 }
  0xa6   :  { %v187_v36 = vmul.f32 %v679_v58, %v679_v58 }
  0xa7   :  { %v66_v42 = vpop.xlane.xlu1 %65  ;;  %v185_v11 = vmul.f32 %v672_v55, %v672_v55  ;;  %v252_v29 = vsub.f32 %v542_v2, %v672_v55  ;;  %v253_v34 = vsub.f32 %v546_v4, %v672_v55 }
  0xa8   :  { %v60_v43 = vpop.xlane.xlu0 %59  ;;  %v684_v60 = vmul.f32 0.00390625, %v66_v42 }
  0xa9   :  { %v690_v3 = vmul.f32 0.00390625, %v60_v43 }
  0xaa   :  { %v188_v43 = vmul.f32 %v684_v60, %v684_v60 }
  0xab   :  { %v72_v44 = vpop.xlane.xlu1 %71 }
  0xac   :  { %v69_v45 = vpop.xlane.xlu0 %68  ;;  %v702_v23 = vmul.f32 0.00390625, %v72_v44 }
  0xad   :  { %v716_v41 = vmul.f32 0.00390625, %v69_v45  ;;  %v186_v45 = vmul.f32 %v690_v3, %v690_v3 }
  0xae   :  { %v190_v37 = vmul.f32 %v702_v23, %v702_v23 }
  0xaf   :  { %v78_v46 = vpop.xlane.xlu1 %77 }
  0xb0   :  { %v75_v48 = vpop.xlane.xlu0 %74  ;;  %v726_v59 = vmul.f32 0.00390625, %v78_v46 }
  0xb1   :  { %v738_v46 = vmul.f32 0.00390625, %v75_v48 }
  0xb3   :  { %v84_v49 = vpop.xlane.xlu1 %83 }
  0xb4   :  { %v668_v51 = vpop.xlane.xlu0 %80 }
  0xb7   :  { %v670_v52 = vpop.xlane.xlu1 %89 }
  0xb8   :  { %v674_v56 = vpop.xlane.xlu0 %86 }
  0xbb   :  { %v122_v63 = vpop.xlane.xlu1 %121 }
  0xbc   :  { %v172_v10 = vmul.f32 0.00390625, %v122_v63  ;;  %v696_v16 = vpop.xlane.xlu0 %92 }
  0xbe   :  { %v198_v35 = vsub.f32 %v172_v10, %v185_v11 }
  0xbf   :  { %v128_v42 = vpop.xlane.xlu1 %127 }
  0xc0   :  { %v211_v50 = vmax.f32 %v198_v35, 0.0  ;;  %v174_v53 = vmul.f32 0.00390625, %v128_v42  ;;  %v125_v54 = vpop.xlane.xlu0 %124  ;;  %v746_v42 = vmul.f32 0.00390625, %v84_v49  ;;  %v191_v49 = vmul.f32 %v738_v46, %v738_v46 }
  0xc1   :  { %v173_v63 = vmul.f32 0.00390625, %v125_v54 }
  0xc2   :  { %v224_v11 = vadd.f32 1e-05, %v211_v50  ;;  %v200_v40 = vsub.f32 %v174_v53, %v187_v36  ;;  %v189_v50 = vmul.f32 %v716_v41, %v716_v41 }
  0xc3   :  { %v199_v57 = vsub.f32 %v173_v63, %v186_v45  ;;  %v134_v47 = vpop.xlane.xlu1 %133  ;;  %v753_v63 = vmul.f32 0.00390625, %v668_v51 }
  0xc4   :  { %425 = vrsqrt.f32 %v224_v11  ;;  %v213_v54 = vmax.f32 %v200_v40, 0.0  ;;  %v176_v44 = vmul.f32 0.00390625, %v134_v47  ;;  %v131_v36 = vpop.xlane.xlu0 %130  ;;  %v192_v40 = vmul.f32 %v726_v59, %v726_v59 }
  0xc5   :  { %v212_v35 = vmax.f32 %v199_v57, 0.0  ;;  %v175_v22 = vmul.f32 0.00390625, %v131_v36  ;;  %v760_v47 = vmul.f32 0.00390625, %v670_v52 }
  0xc6   :  { %v226_v48 = vadd.f32 1e-05, %v213_v54  ;;  %v202_v45 = vsub.f32 %v176_v44, %v189_v50 }
  0xc7   :  { %v225_v11 = vadd.f32 1e-05, %v212_v35  ;;  %v201_v53 = vsub.f32 %v175_v22, %v188_v43  ;;  %v140_v17 = vpop.xlane.xlu1 %139  ;;  %v764_v22 = vmul.f32 %v746_v42, %v746_v42 }
  0xc8   :  { %427 = vrsqrt.f32 %v226_v48  ;;  %v215_v10 = vmax.f32 %v202_v45, 0.0  ;;  %v178_v57 = vmul.f32 0.00390625, %v140_v17  ;;  %v137_v54 = vpop.xlane.xlu0 %136 }
  0xc9   :  { %429 = vrsqrt.f32 %v225_v11  ;;  %v214_v50 = vmax.f32 %v201_v53, 0.0  ;;  %v177_v36 = vmul.f32 0.00390625, %v137_v54  ;;  %v193_v11 = vmul.f32 %v753_v63, %v753_v63 }
  0xca   :  { %v228_v51 = vadd.f32 1e-05, %v215_v10  ;;  %v204_v35 = vsub.f32 %v178_v57, %v191_v49  ;;  %v771_v53 = vmul.f32 0.00390625, %v674_v56  ;;  %v780_v56 = vmul.f32 %v760_v47, %v760_v47 }
  0xcb   :  { %v227_v43 = vadd.f32 1e-05, %v214_v50  ;;  %v203_v48 = vsub.f32 %v177_v36, %v190_v37  ;;  %v146_v45 = vpop.xlane.xlu1 %145  ;;  %v776_v37 = vmul.f32 0.00390625, %v696_v16 }
  0xcc   :  { %431 = vrsqrt.f32 %v228_v51  ;;  %v217_v52 = vmax.f32 %v204_v35, 0.0  ;;  %v180_v10 = vmul.f32 0.00390625, %v146_v45  ;;  %v143_v57 = vpop.xlane.xlu0 %142 }
  0xcd   :  { %433 = vrsqrt.f32 %v227_v43  ;;  %v216_v54 = vmax.f32 %v203_v48, 0.0  ;;  %v179_v44 = vmul.f32 0.00390625, %v143_v57 }
  0xce   :  { %v426_v17 = vpop.eup %425  ;;  %v230_v50 = vadd.f32 1e-05, %v217_v52  ;;  %v206_v36 = vsub.f32 %v180_v10, %v193_v11  ;;  %v195_v11 = vmul.f32 %v771_v53, %v771_v53 }
  0xcf   :  { %v278_v51 = vmul.f32 %v426_v17, %v252_v29  ;;  %v279_v35 = vmul.f32 %v426_v17, %v253_v34  ;;  %v229_v43 = vadd.f32 1e-05, %v216_v54  ;;  %v205_v48 = vsub.f32 %v179_v44, %v192_v40  ;;  %v152_v45 = vpop.xlane.xlu1 %151 }
  0xd0   :  { %435 = vrsqrt.f32 %v230_v50  ;;  %v219_v16 = vmax.f32 %v206_v36, 0.0  ;;  %v182_v57 = vmul.f32 0.00390625, %v152_v45  ;;  %v149_v52 = vpop.xlane.xlu0 %148  ;;  %v794_v34 = vmul.f32 %v776_v37, %v776_v37 }
  0xd1   :  { %v315_v10 = vmul.f32 %v686_v61, %v278_v51  ;;  %v316_v49 = vmul.f32 %v688_v62, %v279_v35  ;;  %437 = vrsqrt.f32 %v229_v43  ;;  %v218_v2 = vmax.f32 %v205_v48, 0.0 }
  0xd2   :  { %v428_v29 = vpop.eup %427  ;;  %v232_v31 = vadd.f32 1e-05, %v219_v16  ;;  %v208_v4 = vsub.f32 %v182_v57, %v195_v11  ;;  %v181_v55 = vmul.f32 0.00390625, %v149_v52  ;;  %v934_v54 = vsub.f32 %v538_v0, %v679_v58 }
  0xd3   :  { %v430_v40 = vpop.eup %429  ;;  %v352_v44 = vadd.f32 %v692_v7, %v315_v10  ;;  %v353_v17 = vadd.f32 %v704_v28, %v316_v49  ;;  %v935_v36 = vsub.f32 %v540_v1, %v679_v58  ;;  %v158_v35 = vpop.xlane.xlu1 %157  ;;  %v936_v43 = vsub.f32 %v554_v8, %v690_v3 }
  0xd4   :  { %v282_v50 = vmul.f32 %v428_v29, %v934_v54  ;;  %v937_v45 = vsub.f32 %v556_v9, %v690_v3  ;;  %439 = vrsqrt.f32 %v232_v31  ;;  %v231_v57 = vadd.f32 1e-05, %v218_v2 }
  0xd5   :  { %v283_v51 = vmul.f32 %v428_v29, %v935_v36  ;;  %v280_v48 = vmul.f32 %v430_v40, %v936_v43  ;;  %378 = vst [vmem:[#allocation5] sm:$0xff] %v352_v44  ;;  %379 = vst [vmem:[#allocation5 + $0x8] sm:$0xff] %v353_v17  ;;  %v221_v11 = vmax.f32 %v208_v4, 0.0  ;;  %v207_v1 = vsub.f32 %v181_v55, %v764_v22  ;;  %v155_v55 = vpop.xlane.xlu0 %154 }
  0xd6   :  { %v281_v16 = vmul.f32 %v430_v40, %v937_v45  ;;  %v319_v0 = vmul.f32 %v686_v61, %v282_v50  ;;  %v432_v58 = vpop.eup %431  ;;  %441 = vrsqrt.f32 %v231_v57  ;;  %v184_v10 = vmul.f32 0.00390625, %v158_v35 }
  0xd7   :  { %v320_v49 = vmul.f32 %v688_v62, %v283_v51  ;;  %v317_v52 = vmul.f32 %v686_v61, %v280_v48  ;;  %v434_v9 = vpop.eup %433  ;;  %v938_v2 = vsub.f32 %v566_v14, %v716_v41  ;;  %v939_v4 = vsub.f32 %v568_v15, %v716_v41 }
  0xd8   :  { %v318_v8 = vmul.f32 %v688_v62, %v281_v16  ;;  %v356_v31 = vadd.f32 %v692_v7, %v319_v0  ;;  %v940_v17 = vsub.f32 %v548_v5, %v684_v60  ;;  %v941_v50 = vsub.f32 %v550_v6, %v684_v60 }
  0xd9   :  { %v357_v3 = vadd.f32 %v704_v28, %v320_v49  ;;  %v286_v29 = vmul.f32 %v432_v58, %v938_v2  ;;  %v287_v22 = vmul.f32 %v432_v58, %v939_v4  ;;  %v354_v40 = vadd.f32 %v692_v7, %v317_v52 }
  0xda   :  { %v355_v44 = vadd.f32 %v704_v28, %v318_v8  ;;  %v284_v54 = vmul.f32 %v434_v9, %v940_v17  ;;  %v285_v36 = vmul.f32 %v434_v9, %v941_v50  ;;  %382 = vst [vmem:[#allocation5 + $0x20] sm:$0xff] %v356_v31  ;;  %v234_v41 = vadd.f32 1e-05, %v221_v11  ;;  %v436_v35 = vpop.eup %435 }
  0xdb   :  { %383 = vst [vmem:[#allocation5 + $0x28] sm:$0xff] %v357_v3  ;;  %v323_v14 = vmul.f32 %v686_v61, %v286_v29  ;;  %v324_v15 = vmul.f32 %v688_v62, %v287_v22  ;;  %v220_v51 = vmax.f32 %v207_v1, 0.0  ;;  %380 = vst [vmem:[#allocation5 + $0x10] sm:$0xff] %v354_v40  ;;  %v210_v48 = vsub.f32 %v184_v10, %v794_v34  ;;  %v438_v6 = vpop.eup %437 }
  0xdc   :  { %381 = vst [vmem:[#allocation5 + $0x18] sm:$0xff] %v355_v44  ;;  %v321_v43 = vmul.f32 %v686_v61, %v284_v54  ;;  %v322_v5 = vmul.f32 %v688_v62, %v285_v36  ;;  %v183_v45 = vmul.f32 0.00390625, %v155_v55  ;;  %v942_v57 = vsub.f32 %v578_v20, %v738_v46 }
  0xdd   :  { %v360_v60 = vadd.f32 %v692_v7, %v323_v14  ;;  %v361_v16 = vadd.f32 %v704_v28, %v324_v15  ;;  %v943_v49 = vsub.f32 %v580_v21, %v738_v46  ;;  %v944_v34 = vsub.f32 %v562_v12, %v702_v23 }
  0xde   :  { %v290_v0 = vmul.f32 %v436_v35, %v942_v57  ;;  %v358_v1 = vadd.f32 %v692_v7, %v321_v43  ;;  %v359_v58 = vadd.f32 %v704_v28, %v322_v5  ;;  %v945_v8 = vsub.f32 %v564_v13, %v702_v23  ;;  %v440_v46 = vpop.eup %439 }
  0xdf   :  { %v291_v11 = vmul.f32 %v436_v35, %v943_v49  ;;  %v288_v52 = vmul.f32 %v438_v6, %v944_v34  ;;  %386 = vst [vmem:[#allocation5 + $0x40] sm:$0xff] %v360_v60  ;;  %387 = vst [vmem:[#allocation5 + $0x48] sm:$0xff] %v361_v16  ;;  %443 = vrsqrt.f32 %v234_v41  ;;  %v233_v21 = vadd.f32 1e-05, %v220_v51 }
  0xe0   :  { %v289_v10 = vmul.f32 %v438_v6, %v945_v8  ;;  %v327_v20 = vmul.f32 %v686_v61, %v290_v0  ;;  %384 = vst [vmem:[#allocation5 + $0x30] sm:$0xff] %v358_v1  ;;  %385 = vst [vmem:[#allocation5 + $0x38] sm:$0xff] %v359_v58  ;;  %v223_v3 = vmax.f32 %v210_v48, 0.0  ;;  %v209_v2 = vsub.f32 %v183_v45, %v780_v56  ;;  %v442_v40 = vpop.eup %441 }
  0xe1   :  { %v328_v9 = vmul.f32 %v688_v62, %v291_v11  ;;  %v325_v31 = vmul.f32 %v686_v61, %v288_v52  ;;  %v946_v29 = vsub.f32 %v590_v26, %v753_v63  ;;  %v947_v22 = vsub.f32 %v592_v27, %v753_v63 }
  0xe2   :  { %v326_v12 = vmul.f32 %v688_v62, %v289_v10  ;;  %v364_v13 = vadd.f32 %v692_v7, %v327_v20  ;;  %445 = vrsqrt.f32 %v233_v21  ;;  %v236_v54 = vadd.f32 1e-05, %v223_v3 }
  0xe3   :  { %v365_v23 = vadd.f32 %v704_v28, %v328_v9  ;;  %v294_v4 = vmul.f32 %v440_v46, %v946_v29  ;;  %v295_v55 = vmul.f32 %v440_v46, %v947_v22  ;;  %v362_v44 = vadd.f32 %v692_v7, %v325_v31 }
  0xe4   :  { %v363_v17 = vadd.f32 %v704_v28, %v326_v12  ;;  %390 = vst [vmem:[#allocation5 + $0x60] sm:$0xff] %v364_v13  ;;  %v948_v26 = vsub.f32 %v574_v18, %v726_v59  ;;  %v949_v27 = vsub.f32 %v576_v19, %v726_v59  ;;  %447 = vrsqrt.f32 %v236_v54 }
  0xe5   :  { %391 = vst [vmem:[#allocation5 + $0x68] sm:$0xff] %v365_v23  ;;  %v331_v56 = vmul.f32 %v686_v61, %v294_v4  ;;  %v332_v50 = vmul.f32 %v688_v62, %v295_v55  ;;  %388 = vst [vmem:[#allocation5 + $0x50] sm:$0xff] %v362_v44  ;;  %v222_v14 = vmax.f32 %v209_v2, 0.0  ;;  %v272_v59 = vsub.f32 %v602_v32, %v771_v53 }
  0xe6   :  { %v292_v36 = vmul.f32 %v442_v40, %v948_v26  ;;  %v293_v63 = vmul.f32 %v442_v40, %v949_v27  ;;  %389 = vst [vmem:[#allocation5 + $0x58] sm:$0xff] %v363_v17  ;;  %v273_v5 = vsub.f32 %v604_v33, %v771_v53  ;;  %v270_v60 = vsub.f32 %v586_v24, %v746_v42 }
  0xe7   :  { %v368_v15 = vadd.f32 %v692_v7, %v331_v56  ;;  %v369_v41 = vadd.f32 %v704_v28, %v332_v50  ;;  %v235_v43 = vadd.f32 1e-05, %v222_v14  ;;  %v271_v16 = vsub.f32 %v588_v25, %v746_v42 }
  0xe8   :  { %v329_v51 = vmul.f32 %v686_v61, %v292_v36  ;;  %v330_v35 = vmul.f32 %v688_v62, %v293_v63  ;;  %v276_v33 = vsub.f32 %v614_v38, %v776_v37  ;;  %v277_v53 = vsub.f32 %v616_v39, %v776_v37  ;;  %v950_v38 = vld [vmem:[#allocation8_spill] sm:$0xff] }
  0xe9   :  { %394 = vst [vmem:[#allocation5 + $0x80] sm:$0xff] %v368_v15  ;;  %395 = vst [vmem:[#allocation5 + $0x88] sm:$0xff] %v369_v41  ;;  %449 = vrsqrt.f32 %v235_v43  ;;  %v444_v48 = vpop.eup %443  ;;  %v274_v8 = vsub.f32 %v598_v30, %v760_v47  ;;  %v275_v10 = vsub.f32 %v950_v38, %v760_v47 }
  0xea   :  { %v366_v18 = vadd.f32 %v692_v7, %v329_v51  ;;  %v367_v19 = vadd.f32 %v704_v28, %v330_v35  ;;  %v298_v45 = vmul.f32 %v444_v48, %v272_v59  ;;  %v299_v6 = vmul.f32 %v444_v48, %v273_v5 }
  0xec   :  { %392 = vst [vmem:[#allocation5 + $0x70] sm:$0xff] %v366_v18  ;;  %393 = vst [vmem:[#allocation5 + $0x78] sm:$0xff] %v367_v19  ;;  %v446_v57 = vpop.eup %445  ;;  %v335_v0 = vmul.f32 %v686_v61, %v298_v45  ;;  %v336_v32 = vmul.f32 %v688_v62, %v299_v6 }
  0xed   :  { %v296_v49 = vmul.f32 %v446_v57, %v270_v60  ;;  %v297_v11 = vmul.f32 %v446_v57, %v271_v16 }
  0xee   :  { %v448_v1 = vpop.eup %447  ;;  %v372_v58 = vadd.f32 %v692_v7, %v335_v0  ;;  %v373_v24 = vadd.f32 %v704_v28, %v336_v32 }
  0xef   :  { %v333_v25 = vmul.f32 %v686_v61, %v296_v49  ;;  %v334_v42 = vmul.f32 %v688_v62, %v297_v11  ;;  %v302_v34 = vmul.f32 %v448_v1, %v276_v33  ;;  %v303_v52 = vmul.f32 %v448_v1, %v277_v53 }
  0xf0   :  { %398 = vst [vmem:[#allocation5 + $0xa0] sm:$0xff] %v372_v58  ;;  %399 = vst [vmem:[#allocation5 + $0xa8] sm:$0xff] %v373_v24 }
  0xf1   :  { %v370_v39 = vadd.f32 %v692_v7, %v333_v25  ;;  %v371_v37 = vadd.f32 %v704_v28, %v334_v42  ;;  %v339_v20 = vmul.f32 %v686_v61, %v302_v34  ;;  %v340_v9 = vmul.f32 %v688_v62, %v303_v52 }
  0xf3   :  { %v450_v21 = vpop.eup %449  ;;  %396 = vst [vmem:[#allocation5 + $0x90] sm:$0xff] %v370_v39  ;;  %397 = vst [vmem:[#allocation5 + $0x98] sm:$0xff] %v371_v37  ;;  %v376_v46 = vadd.f32 %v692_v7, %v339_v20  ;;  %v377_v30 = vadd.f32 %v704_v28, %v340_v9 }
  0xf4   :  { %v300_v31 = vmul.f32 %v450_v21, %v274_v8  ;;  %v301_v12 = vmul.f32 %v450_v21, %v275_v10 }
  0xf5   :  { %402 = vst [vmem:[#allocation5 + $0xc0] sm:$0xff] %v376_v46  ;;  %403 = vst [vmem:[#allocation5 + $0xc8] sm:$0xff] %v377_v30 }
  0xf6   :  { %v337_v47 = vmul.f32 %v686_v61, %v300_v31  ;;  %v338_v3 = vmul.f32 %v688_v62, %v301_v12 }
  0xf8   :  { %v374_v2 = vadd.f32 %v692_v7, %v337_v47  ;;  %v375_v13 = vadd.f32 %v704_v28, %v338_v3 }
  0xfa   :  { %400 = vst [vmem:[#allocation5 + $0xb0] sm:$0xff] %v374_v2  ;;  %401 = vst [vmem:[#allocation5 + $0xb8] sm:$0xff] %v375_v13 }
  0xfb   :  { %484 = shalt.err (!%p481_p12)
}
  0xfc   :  { %s485_s5 = scalar_lea.hbm %s931_s3, 3328 }
  0xfd   :  { %p486_p13 = scmp.ne.s32.totalorder %s931_s3, %s485_s5  ;;  %p489_p0 = scmp.lt.u32.totalorder %s485_s5, %s931_s3 }
  0xff   :  { %p491_p1 = pnand %p489_p0, %p486_p13 }
 0x101   :  { %494 = shalt.err (!%p491_p1)
}
 0x102   :  { %415 = dma.vmem_to_hbm [thread:$0]  %s410_s2, 3328, %s931_s3, [#allocation4], %s500_s22, %s500_s22, %s501_s23  }
 0x103   :  { %497 = dma.done.wait [#allocation4], 3328  }
 0x104   :  { %498 = vsyncadd [#allocation4], 4294963968 }
 0x105   :  { %419 = vsyncpa [#allocation3], 1 }
 0x106   :  { %420 = vsyncpa [#allocation4], 1 }

</bundles_post_ra>
